<compile_context>
chip_gen: v7x
topology: tpu7x:2x2x1
jax: 0.10.0
libtpu: 0.0.40
codegen_flags: <defaults>
</compile_context>

<pallas_src>
import functools

import jax
import jax.numpy as jnp
from jax.experimental import pallas as pl
from jax.experimental.pallas import tpu as pltpu


def _bilinear_weight_matrix(out_size: int, in_size: int) -> jnp.ndarray:
    """(out_size, in_size) row-stochastic matrix reproducing PyTorch
    F.interpolate(mode='bilinear', align_corners=False) along one axis."""
    o = jnp.arange(out_size, dtype=jnp.float32)
    src = jnp.maximum((o + 0.5) * (in_size / out_size) - 0.5, 0.0)  # PyTorch clamps at 0
    i0 = jnp.minimum(jnp.floor(src).astype(jnp.int32), in_size - 1)
    i1 = jnp.minimum(i0 + 1, in_size - 1)
    w1 = src - i0.astype(jnp.float32)
    w0 = 1.0 - w1
    eye = jnp.eye(in_size, dtype=jnp.float32)
    return w0[:, None] * eye[i0] + w1[:, None] * eye[i1]


def _nearest_weight_matrix(out_size: int, in_size: int) -> jnp.ndarray:
    """(out_size, in_size) 0/1 matrix reproducing F.interpolate(mode='nearest')."""
    o = jnp.arange(out_size, dtype=jnp.float32)
    idx = jnp.minimum(jnp.floor(o * (in_size / out_size)).astype(jnp.int32), in_size - 1)
    return jnp.eye(in_size, dtype=jnp.float32)[idx]


def _mixupsample_kernel(x_ref, whb_ref, whn_ref, wwbT_ref, wwnT_ref, o_ref,
                        ub_s, un_s):
    TB = x_ref.shape[0]
    Ho = ub_s.shape[1]
    W = ub_s.shape[2]
    Wo = wwbT_ref.shape[1]
    cdt = ub_s.dtype                      # intermediate/compute dtype (f32 or bf16)

    # Weights stay resident across the plane loop (no broadcast over TB).
    whb = whb_ref[...]                    # (Ho, H), mixing m already folded in
    whn = whn_ref[...]                    # (Ho, H), (1 - m) already folded in

    # Stage 1 (H direction): per-plane 2-D dots into VMEM scratch.
    @pl.loop(0, TB)
    def _(i):
        xi = x_ref[i]                                                     # (H, W)
        ub_s[i] = jnp.dot(whb, xi, preferred_element_type=jnp.float32).astype(cdt)
        un_s[i] = jnp.dot(whn, xi, preferred_element_type=jnp.float32).astype(cdt)

    # Stage 2 (W direction): two large GEMMs with M = TB*Ho (leading-dim
    # collapse is free), f32 accumulation, single epilogue add.
    ub = ub_s[...].reshape(TB * Ho, W)
    un = un_s[...].reshape(TB * Ho, W)
    y = jnp.dot(ub, wwbT_ref[...], preferred_element_type=jnp.float32)
    y = y + jnp.dot(un, wwnT_ref[...], preferred_element_type=jnp.float32)
    o_ref[...] = y.reshape(TB, Ho, Wo).astype(o_ref.dtype)


def _vmem_budget_bytes():
    """(working-set budget, scoped vmem limit) per TPU generation.

    v5e/v6e have 128 MiB VMEM per TensorCore -> big tiles / raised limit.
    v7x has 64 MiB per TensorCore (32 MiB scoped default) and unknown chips
    take the conservative path.
    """
    kind = ""
    try:
        kind = jax.devices()[0].device_kind.lower()
    except Exception:
        pass
    if ("v5" in kind) or ("v6" in kind):
        return 48 << 20, 96 << 20
    return 20 << 20, 32 << 20


def _choose_tb(B, H, W, Ho, Wo, in_bytes, c_bytes, w_bytes, budget_bytes):
    """Planes per grid step: as large as the VMEM budget allows while keeping
    >= 4 grid steps (>= 2 per v7x TensorCore) whenever possible.  Non-divisor
    TB is fine: the ragged last block is masked."""
    per_plane = (2 * H * W * in_bytes        # double-buffered input block
                 + 2 * Ho * Wo * in_bytes    # double-buffered output block
                 + 2 * Ho * W * c_bytes      # stage-1 scratches (ub_s, un_s)
                 + 2 * Ho * W * c_bytes      # stage-2 LHS values
                 + 2 * Ho * Wo * 4)          # f32 stage-2 partial results
    fixed = 2 * (2 * Ho * H + 2 * W * Wo) * w_bytes   # double-buffered weights
    cap = max(1, (budget_bytes - fixed) // per_plane)
    cap = min(cap, B)
    min_steps = min(B, 4)
    steps = max(min_steps, pl.cdiv(B, cap))
    return max(1, pl.cdiv(B, steps))


@functools.partial(jax.jit, static_argnames=("scale_factor",))
def mixupsample(x: jnp.ndarray, mixing: jnp.ndarray, scale_factor: int = 2) -> jnp.ndarray:
    """x: (N, C, H, W). mixing: scalar parameter. Returns (N, C, H*s, W*s)."""
    N, C, H, W = x.shape
    s = int(scale_factor)
    Ho, Wo = H * s, W * s
    B = N * C

    m = jnp.asarray(mixing, dtype=jnp.float32)
    is_bf16 = x.dtype == jnp.bfloat16
    # Weight / intermediate dtype: bf16 inputs run the MXU in fast bf16 mode
    # (f32 accumulation); f32 inputs stay f32 throughout.  Note: folding the
    # mixing scalar into bf16 weights rounds m*w once, i.e. mix-before-sum vs
    # PyTorch's mix-after-sum -- within bf16 noise.
    wdt = jnp.bfloat16 if is_bf16 else jnp.float32
    cdt = wdt

    whb = (_bilinear_weight_matrix(Ho, H) * m).astype(wdt)           # (Ho, H)
    whn = (_nearest_weight_matrix(Ho, H) * (1.0 - m)).astype(wdt)    # (Ho, H)
    wwbT = _bilinear_weight_matrix(Wo, W).T.astype(wdt)              # (W, Wo)
    wwnT = _nearest_weight_matrix(Wo, W).T.astype(wdt)               # (W, Wo)

    budget, vmem_limit = _vmem_budget_bytes()
    TB = _choose_tb(B, H, W, Ho, Wo,
                    jnp.dtype(x.dtype).itemsize,
                    jnp.dtype(cdt).itemsize,
                    jnp.dtype(wdt).itemsize,
                    budget)
    grid_len = pl.cdiv(B, TB)            # ragged last block -> masked writes

    x_flat = x.reshape(B, H, W)

    out = pl.pallas_call(
        _mixupsample_kernel,
        out_shape=jax.ShapeDtypeStruct((B, Ho, Wo), x.dtype),
        grid=(grid_len,),
        in_specs=[
            pl.BlockSpec((TB, H, W), lambda i: (i, 0, 0)),   # TB input planes
            pl.BlockSpec((Ho, H), lambda i: (0, 0)),         # H bilinear weights (m folded)
            pl.BlockSpec((Ho, H), lambda i: (0, 0)),         # H nearest  weights (1-m folded)
            pl.BlockSpec((W, Wo), lambda i: (0, 0)),         # W bilinear weights (T)
            pl.BlockSpec((W, Wo), lambda i: (0, 0)),         # W nearest  weights (T)
        ],
        out_specs=pl.BlockSpec((TB, Ho, Wo), lambda i: (i, 0, 0)),
        scratch_shapes=[
            pltpu.VMEM((TB, Ho, W), cdt),                    # bilinear stage-1 result
            pltpu.VMEM((TB, Ho, W), cdt),                    # nearest  stage-1 result
        ],
        compiler_params=pltpu.CompilerParams(
            dimension_semantics=("parallel",),
            vmem_limit_bytes=vmem_limit,
        ),
    )(x_flat, whb, whn, wwbT, wwnT)

    return out.reshape(N, C, Ho, Wo)


def _reference(x, mixing, scale_factor=2):
    """Pure-JAX gather-based reference with PyTorch interpolate semantics."""
    N, C, H, W = x.shape
    Ho, Wo = H * scale_factor, W * scale_factor

    def coords(out_size, in_size):
        o = jnp.arange(out_size, dtype=jnp.float32)
        src = jnp.maximum((o + 0.5) * (in_size / out_size) - 0.5, 0.0)
        i0 = jnp.minimum(jnp.floor(src).astype(jnp.int32), in_size - 1)
        i1 = jnp.minimum(i0 + 1, in_size - 1)
        w1 = src - i0.astype(jnp.float32)
        return i0, i1, w1

    h0, h1, wh1 = coords(Ho, H)
    w0, w1, ww1 = coords(Wo, W)
    top = x[:, :, h0, :] * (1 - wh1)[None, None, :, None] + x[:, :, h1, :] * wh1[None, None, :, None]
    bil = top[:, :, :, w0] * (1 - ww1)[None, None, None, :] + top[:, :, :, w1] * ww1[None, None, None, :]

    hi = jnp.minimum(jnp.floor(jnp.arange(Ho) * (H / Ho)).astype(jnp.int32), H - 1)
    wi = jnp.minimum(jnp.floor(jnp.arange(Wo) * (W / Wo)).astype(jnp.int32), W - 1)
    nea = x[:, :, hi, :][:, :, :, wi]

    return mixing * bil + (1.0 - mixing) * nea


if __name__ == "__main__":
    key = jax.random.PRNGKey(0)
    N, C, H, W = 2, 4, 16, 16
    x = jax.random.normal(key, (N, C, H, W), dtype=jnp.float32)

    # Deterministic parameter init (matches nn.Parameter(torch.tensor(0.5)))
    mixing = jnp.float32(0.5)
    scale_factor = 2

    out = mixupsample(x, mixing, scale_factor=scale_factor)
    out = jax.block_until_ready(out)

    ref = _reference(x, mixing, scale_factor)
    assert out.shape == (N, C, H * scale_factor, W * scale_factor)
    assert jnp.allclose(out, ref, atol=1e-5, rtol=1e-5), "f32 mismatch vs reference"

    # bf16 path (bf16 weights + bf16 stage-1 intermediates, f32 accumulation).
    xb = x.astype(jnp.bfloat16)
    outb = jax.block_until_ready(mixupsample(xb, mixing, scale_factor=scale_factor))
    assert jnp.allclose(outb.astype(jnp.float32), ref, atol=1e-1, rtol=1e-1), \
        "bf16 mismatch vs reference"

    print("KERNEL_OK")
</pallas_src>

<mosaic_0001>
module attributes {stable_mosaic.version = 11 : i64} {
  func.func @_mixupsample_kernel(%arg0: i32, %arg1: memref<2x16x16xf32, #tpu.memory_space<vmem>>, %arg2: memref<32x16xf32, #tpu.memory_space<vmem>>, %arg3: memref<32x16xf32, #tpu.memory_space<vmem>>, %arg4: memref<16x32xf32, #tpu.memory_space<vmem>>, %arg5: memref<16x32xf32, #tpu.memory_space<vmem>>, %arg6: memref<2x32x32xf32, #tpu.memory_space<vmem>>, %arg7: memref<2x32x16xf32, #tpu.memory_space<vmem>>, %arg8: memref<2x32x16xf32, #tpu.memory_space<vmem>>) attributes {dimension_semantics = [#tpu.dimension_semantics<parallel>], iteration_bounds = array<i64: 4>, scalar_prefetch = 0 : i64, scratch_operands = 2 : i64, tpu.core_type = #tpu.core_type<tc>, window_params = [{transform_indices = @transform_0, window_bounds = array<i64: 2, 16, 16>}, {pipeline_mode = #tpu.pipeline_mode<synchronous>, transform_indices = @transform_1, window_bounds = array<i64: 32, 16>}, {pipeline_mode = #tpu.pipeline_mode<synchronous>, transform_indices = @transform_2, window_bounds = array<i64: 32, 16>}, {pipeline_mode = #tpu.pipeline_mode<synchronous>, transform_indices = @transform_3, window_bounds = array<i64: 16, 32>}, {pipeline_mode = #tpu.pipeline_mode<synchronous>, transform_indices = @transform_4, window_bounds = array<i64: 16, 32>}, {transform_indices = @transform_5, window_bounds = array<i64: 2, 32, 32>}]} {
    %c0 = arith.constant 0 : index
    %c0_0 = arith.constant 0 : index
    %0 = vector.load %arg2[%c0, %c0_0] : memref<32x16xf32, #tpu.memory_space<vmem>>, vector<32x16xf32>
    %c0_1 = arith.constant 0 : index
    %c0_2 = arith.constant 0 : index
    %1 = vector.load %arg3[%c0_1, %c0_2] : memref<32x16xf32, #tpu.memory_space<vmem>>, vector<32x16xf32>
    %c0_i32 = arith.constant 0 : i32
    %c2_i32 = arith.constant 2 : i32
    %2 = arith.addi %c0_i32, %c2_i32 : i32
    %c1_i32 = arith.constant 1 : i32
    scf.for %arg9 = %c0_i32 to %2 step %c1_i32  : i32 {
      %c1_i32_18 = arith.constant 1 : i32
      %14 = arith.muli %arg9, %c1_i32_18 : i32
      %c0_i32_19 = arith.constant 0 : i32
      %15 = arith.addi %c0_i32_19, %14 : i32
      %16 = arith.index_cast %15 : i32 to index
      %c0_20 = arith.constant 0 : index
      %c0_21 = arith.constant 0 : index
      %17 = vector.load %arg1[%16, %c0_20, %c0_21] : memref<2x16x16xf32, #tpu.memory_space<vmem>>, vector<1x16x16xf32>
      %18 = vector.shape_cast %17 : vector<1x16x16xf32> to vector<16x16xf32>
      %cst_22 = arith.constant dense<0.000000e+00> : vector<32x16xf32>
      %19 = tpu.matmul %0, %18, %cst_22 {dimension_numbers = #tpu.dot_dimension_numbers<[1], [0], [0], [1], [0, 0, 1, 1], [], []>} : vector<32x16xf32>, vector<16x16xf32>, vector<32x16xf32> -> vector<32x16xf32>
      %20 = arith.index_cast %15 : i32 to index
      %c0_23 = arith.constant 0 : index
      %c0_24 = arith.constant 0 : index
      %21 = vector.load %arg7[%20, %c0_23, %c0_24] : memref<2x32x16xf32, #tpu.memory_space<vmem>>, vector<1x32x16xf32>
      %22 = vector.shape_cast %21 : vector<1x32x16xf32> to vector<32x16xf32>
      %23 = vector.shape_cast %19 : vector<32x16xf32> to vector<1x32x16xf32>
      tpu.vector_store %arg7[%20, %c0_23, %c0_24], %23 {strides = array<i32>} : memref<2x32x16xf32, #tpu.memory_space<vmem>>, vector<1x32x16xf32>,
      %cst_25 = arith.constant dense<0.000000e+00> : vector<32x16xf32>
      %24 = tpu.matmul %1, %18, %cst_25 {dimension_numbers = #tpu.dot_dimension_numbers<[1], [0], [0], [1], [0, 0, 1, 1], [], []>} : vector<32x16xf32>, vector<16x16xf32>, vector<32x16xf32> -> vector<32x16xf32>
      %25 = arith.index_cast %15 : i32 to index
      %c0_26 = arith.constant 0 : index
      %c0_27 = arith.constant 0 : index
      %26 = vector.load %arg8[%25, %c0_26, %c0_27] : memref<2x32x16xf32, #tpu.memory_space<vmem>>, vector<1x32x16xf32>
      %27 = vector.shape_cast %26 : vector<1x32x16xf32> to vector<32x16xf32>
      %28 = vector.shape_cast %24 : vector<32x16xf32> to vector<1x32x16xf32>
      tpu.vector_store %arg8[%25, %c0_26, %c0_27], %28 {strides = array<i32>} : memref<2x32x16xf32, #tpu.memory_space<vmem>>, vector<1x32x16xf32>,
    }
    %c2_i32_3 = arith.constant 2 : i32
    %c0_4 = arith.constant 0 : index
    %c0_5 = arith.constant 0 : index
    %c0_6 = arith.constant 0 : index
    %3 = vector.load %arg7[%c0_4, %c0_5, %c0_6] : memref<2x32x16xf32, #tpu.memory_space<vmem>>, vector<2x32x16xf32>
    %4 = vector.shape_cast %3 : vector<2x32x16xf32> to vector<64x16xf32>
    %c0_7 = arith.constant 0 : index
    %c0_8 = arith.constant 0 : index
    %c0_9 = arith.constant 0 : index
    %5 = vector.load %arg8[%c0_7, %c0_8, %c0_9] : memref<2x32x16xf32, #tpu.memory_space<vmem>>, vector<2x32x16xf32>
    %6 = vector.shape_cast %5 : vector<2x32x16xf32> to vector<64x16xf32>
    %c0_10 = arith.constant 0 : index
    %c0_11 = arith.constant 0 : index
    %7 = vector.load %arg4[%c0_10, %c0_11] : memref<16x32xf32, #tpu.memory_space<vmem>>, vector<16x32xf32>
    %cst = arith.constant dense<0.000000e+00> : vector<64x32xf32>
    %8 = tpu.matmul %4, %7, %cst {dimension_numbers = #tpu.dot_dimension_numbers<[1], [0], [0], [1], [0, 0, 1, 1], [], []>} : vector<64x16xf32>, vector<16x32xf32>, vector<64x32xf32> -> vector<64x32xf32>
    %c0_12 = arith.constant 0 : index
    %c0_13 = arith.constant 0 : index
    %9 = vector.load %arg5[%c0_12, %c0_13] : memref<16x32xf32, #tpu.memory_space<vmem>>, vector<16x32xf32>
    %cst_14 = arith.constant dense<0.000000e+00> : vector<64x32xf32>
    %10 = tpu.matmul %6, %9, %cst_14 {dimension_numbers = #tpu.dot_dimension_numbers<[1], [0], [0], [1], [0, 0, 1, 1], [], []>} : vector<64x16xf32>, vector<16x32xf32>, vector<64x32xf32> -> vector<64x32xf32>
    %11 = arith.addf %8, %10 : vector<64x32xf32>
    %12 = vector.shape_cast %11 : vector<64x32xf32> to vector<2x32x32xf32>
    %c0_15 = arith.constant 0 : index
    %c0_16 = arith.constant 0 : index
    %c0_17 = arith.constant 0 : index
    %13 = vector.load %arg6[%c0_15, %c0_16, %c0_17] : memref<2x32x32xf32, #tpu.memory_space<vmem>>, vector<2x32x32xf32>
    tpu.vector_store %arg6[%c0_15, %c0_16, %c0_17], %12 {strides = array<i32>} : memref<2x32x32xf32, #tpu.memory_space<vmem>>, vector<2x32x32xf32>,
    return
  }
  func.func @transform_0(%arg0: i32) -> (i32, i32, i32) {
    %c0_i32 = arith.constant 0 : i32
    %c0_i32_0 = arith.constant 0 : i32
    %c0_i32_1 = arith.constant 0 : i32
    return %arg0, %c0_i32, %c0_i32_0 : i32, i32, i32
  }
  func.func @transform_1(%arg0: i32) -> (i32, i32) {
    %c0_i32 = arith.constant 0 : i32
    %c0_i32_0 = arith.constant 0 : i32
    %c0_i32_1 = arith.constant 0 : i32
    return %c0_i32, %c0_i32_0 : i32, i32
  }
  func.func @transform_2(%arg0: i32) -> (i32, i32) {
    %c0_i32 = arith.constant 0 : i32
    %c0_i32_0 = arith.constant 0 : i32
    %c0_i32_1 = arith.constant 0 : i32
    return %c0_i32, %c0_i32_0 : i32, i32
  }
  func.func @transform_3(%arg0: i32) -> (i32, i32) {
    %c0_i32 = arith.constant 0 : i32
    %c0_i32_0 = arith.constant 0 : i32
    %c0_i32_1 = arith.constant 0 : i32
    return %c0_i32, %c0_i32_0 : i32, i32
  }
  func.func @transform_4(%arg0: i32) -> (i32, i32) {
    %c0_i32 = arith.constant 0 : i32
    %c0_i32_0 = arith.constant 0 : i32
    %c0_i32_1 = arith.constant 0 : i32
    return %c0_i32, %c0_i32_0 : i32, i32
  }
  func.func @transform_5(%arg0: i32) -> (i32, i32, i32) {
    %c0_i32 = arith.constant 0 : i32
    %c0_i32_0 = arith.constant 0 : i32
    %c0_i32_1 = arith.constant 0 : i32
    return %arg0, %c0_i32, %c0_i32_0 : i32, i32, i32
  }
}

</mosaic_0001>

<bundles_post_ra>
// kernel: mixupsample.1
= control target key start
LH: loop header
LB: loop body
LE: loop exit
PB: predicated region body
PF: predicated region fallthrough
CT: control target
= control target key end

     0   :  { %10 = vsyncpa [#allocation5], 0  ;;  %s1340_s0 = inlined_call_operand.vmem [shape: f32[8,16,16], index: 0, kind: input, shape index: {}]   ;;  %s1341_s1 = inlined_call_operand.vmem [shape: f32[32,16], index: 1, kind: input, shape index: {}]   ;;  %s1342_s2 = inlined_call_operand.vmem [shape: f32[32,16], index: 2, kind: input, shape index: {}]   ;;  %s1343_s3 = inlined_call_operand.vmem [shape: f32[16,32], index: 3, kind: input, shape index: {}]   ;;  %s1344_s4 = inlined_call_operand.vmem [shape: f32[16,32], index: 4, kind: input, shape index: {}]   ;;  %s1345_s5 = inlined_call_operand.hbm [shape: f32[8,32,32], index: 5, kind: output, shape index: {}]  }
   0x1   :  { %12 = vsyncpa [#allocation5 + $0x1], 0  ;;  %s1134_s18 = smov 0   ;;  %s1136_s19 = smov 0  }
   0x2   :  { %s1138_s20 = smov 0   ;;  %s1140_s21 = smov 0  }
   0x3 LB: > { %s1155_s22 = sadd.s32 4294967295, %s1095_s21   ;;  %s829_s23 = sadd.s32 4294967294, %s1095_s21   ;;  %s1095_s21 = sphi %s1140_s21, %s1351_s21   ;;  %s1091_s20 = sphi %s1138_s20, %s1350_s20   ;;  %s1087_s19 = sphi %s1136_s19, %s1349_s19   ;;  %s1083_s18 = sphi %s1134_s18, %s1348_s18  }
   0x4   : > { %s1159_s24 = sadd.s32 1, %s1095_s21   ;;  %s135_s25 = sadd.s32 1, %s1091_s20 }
   0x5   : > { %s132_s26 = ssub.s32 %s1095_s21, %s1159_s24  ;;  %p145_p0 = scmp.ne.s32.totalorder %s1091_s20, %s1087_s19 }
   0x6   : > { %p133_p1 = scmp.eq.s32.totalorder %s132_s26, 0  ;;  %p146_p2 = scmp.eq.s32.totalorder %s1155_s22, 3 }
   0x7   : > { %p151_p3 = scmp.ne.s32.totalorder %s1087_s19, %s1083_s18  ;;  %p152_p4 = scmp.eq.s32.totalorder %s829_s23, 3 }
   0x8   : > { %s1170_s27 = scalar_select %p133_p1, %s1091_s20, %s135_s25  }
   0x9   : > { %p1172_p5 = por %p146_p2, %p145_p0  ;;  %p1176_p6 = por %p152_p4, %p151_p3 }
   0xa   : > { %p832_p7 = scmp.ge.s32.totalorder %s1095_s21, 1  ;;  %p192_p8 = scmp.lt.s32.totalorder %s1095_s21, 5 }
   0xc   : > { %p193_p9 = pnand %p832_p7, %p192_p8 }
   0xd   : > { %s218_s30 = sand.u32 (!%p193_p9), 1, %s1087_s19   ;;  %s834_s6 = sshll.u32 (!%p193_p9), %s1155_s22, 1  ;;  %v229_v0 = vld [vmem:[%s1341_s1] sm:$0xff] (!%p193_p9)  ;;  %v230_v1 = vld [vmem:[%s1341_s1 + $0x8] sm:$0xff] (!%p193_p9)  ;;  %v231_v2 = vld [vmem:[%s1341_s1 + $0x10] sm:$0xff] (!%p193_p9) }
   0xe   : > { %196 = sbr.rel (%p193_p9) target bundleno = 502 (0x1f6), region = 40  ;;  %s833_s13 = sshll.u32 (!%p193_p9), %s218_s30, 6  ;;  %v232_v3 = vld [vmem:[%s1341_s1 + $0x18] sm:$0xff] (!%p193_p9)  ;;  %v233_v4 = vld [vmem:[%s1342_s2] sm:$0xff] (!%p193_p9)  ;;  %v234_v5 = vld [vmem:[%s1342_s2 + $0x8] sm:$0xff] (!%p193_p9) }
   0xf   : > { %p222_p10 = scmp.lt.s32.totalorder (!%p193_p9), %s834_s6, 7  ;;  %v235_v6 = vld [vmem:[%s1342_s2 + $0x10] sm:$0xff] (!%p193_p9)  ;;  %v236_v7 = vld [vmem:[%s1342_s2 + $0x18] sm:$0xff] (!%p193_p9)  ;;  %s1215_s15 = scalar_lea.vmem (!%p193_p9), [#allocation4], %s833_s13 }
  0x10   : > { %s1217_s16 = smov (!%p193_p9), 0  }
  0x15   : > { %s1353_s6 = smov (!%p222_p10, %s834_s6), 7 }
  0x16   : > { %s869_s10 = sshll.u32 %s1353_s6, 4 }
  0x17   : > { %s1213_s14 = scalar_lea.vmem %s1340_s0, %s869_s10 }
  0x18 LB: >> { %vm247_vm0 = vcmask 130048   ;;  %s837_s6 = sshll.u32 %s1099_s16, 4  ;;  %s842_s13 = sshll.u32 %s1099_s16, 5  ;;  %s1099_s16 = sphi %s1217_s16, %s242_s16  }
  0x19   : >> { %908 = vmatprep.mubr.msk.f32.mxu0 %vm247_vm0, %v229_v0  ;;  %918 = vmatprep.mubr.msk.f32.mxu1 %vm247_vm0, %v233_v4  ;;  %s244_s17 = scalar_lea.vmem %s1213_s14, %s837_s6  ;;  %s346_s23 = scalar_lea.vmem [#allocation2], %s842_s13 }
  0x1a   : >> { %v245_v8 = vld [vmem:[%s244_s17] sm:$0xff]  ;;  %v246_v9 = vld [vmem:[%s244_s17 + $0x8] sm:$0xff]  ;;  %s448_s25 = scalar_lea.vmem [#allocation3], %s842_s13  ;;  %s242_s16 = sadd.s32 1, %s1099_s16  }
  0x1b   : >> { %v956_v10 = vpack.c.bf16 %v246_v9, %v245_v8  ;;  %p239_p11 = scmp.ge.s32.totalorder %s242_s16, 2  }
  0x1c   : > { %v471_v19 = vld [vmem:[%s1344_s4] sm:$0xff] (%p239_p11)  ;;  %v472_v20 = vld [vmem:[%s1344_s4 + $0x8] sm:$0xff] (%p239_p11)  ;;  %vm732_vm1 = vcmask (%p239_p11), 261120   ;;  %s871_s14 = sshll.u32 (%p239_p11), %s1155_s22, 10  ;;  %s756_s16 = sshll.u32 (%p239_p11), %s1215_s15, 4  ;;  %s1291_s16 = int_to_ptr.vmem [resolvable:$true] %s756_s16 }
  0x1d   : >> { %957 = vmatprep.subr.bf16.mxu0 %v956_v10  ;;  %961 = vmatprep.subr.bf16.mxu1 %v956_v10  ;;  %v469_v21 = vld [vmem:[%s1343_s3] sm:$0xff] (%p239_p11)  ;;  %v964_v22 = vpack.c.bf16 (%p239_p11), %v472_v20, %v471_v19  ;;  %v470_v23 = vld [vmem:[%s1343_s3 + $0x8] sm:$0xff] (%p239_p11)  ;;  %s1299_s22 = scalar_lea.sflag (%p239_p11), [#allocation5], %s218_s30  ;;  %s1101_s26 = smov (%p239_p11), [#allocation4]  }
  0x1e   : >> { %959 = vmatpush3.bf16.msra.mxu0 %v956_v10  ;;  %963 = vmatpush3.bf16.msra.mxu1 %v956_v10  ;;  %v968_v26 = vpack.c.bf16 (%p239_p11), %v470_v23, %v469_v21  ;;  %s1033_s7 = sshll.u32 (%p239_p11), %s1101_s26, 4  ;;  %s1034_s7 = int_to_ptr.vmem [resolvable:$false] %s1033_s7 }
  0x1f   : > { %965 = vmatprep.subr.bf16.mxu1 (%p239_p11), %v964_v22  ;;  %s1035_s8 = scalar_lea.vmem (%p239_p11), %s1034_s7, 2048  ;;  %p1036_p1 = scmp.lt.s32.totalorder (%p239_p11), %s1291_s16, %s1034_s7 }
  0x20   : > { %969 = vmatprep.subr.bf16.mxu0 (%p239_p11), %v968_v26 }
  0x21   : >> { %909 = vmatmul.mubr.msk.f32.vlgmr.msra.gmra.mrb[0].mxu0 %vm247_vm0, %v230_v1  ;;  %919 = vmatmul.mubr.msk.f32.vlgmr.msra.gmra.mrb[0].mxu1 %vm247_vm0, %v234_v5 }
  0x22   : >> { %911 = vmatprep.mubr.msk.f32.mxu0 %vm247_vm0, %v231_v2  ;;  %921 = vmatprep.mubr.msk.f32.mxu1 %vm247_vm0, %v235_v6 }
  0x23   : > { %967 = vmatpush3.bf16.msra.mxu1 (%p239_p11), %v964_v22  ;;  %971 = vmatpush3.bf16.msra.mxu0 (%p239_p11), %v968_v26 }
  0x25   : >> { %912 = vmatmul.mubr.msk.f32.gmra.mrb[2].mxu0 %vm247_vm0, %v232_v3  ;;  %922 = vmatmul.mubr.msk.f32.gmra.mrb[2].mxu1 %vm247_vm0, %v236_v7 }
  0xf4   : >> { %v910_v11 = vpop.f32.mrb[0].mxu0  ;;  %v920_v12 = vpop.f32.mrb[0].mxu1  ;;  %241 = sbr.rel (!%p239_p11) target bundleno = 24 (0x18), region = 85 }
  0xf5   : >> { %348 = vst.msk [vmem:[%s346_s23 + $0x8] sm:$0xff] %vm247_vm0, %v910_v11  ;;  %450 = vst.msk [vmem:[%s448_s25 + $0x8] sm:$0xff] %vm247_vm0, %v920_v12  ;;  %v326_v13 = vpop.f32.mrb[1].mxu0  ;;  %v429_v14 = vpop.f32.mrb[1].mxu1 }
  0xf6   : >> { %347 = vst.msk [vmem:[%s346_s23] sm:$0xff] %vm247_vm0, %v326_v13  ;;  %449 = vst.msk [vmem:[%s448_s25] sm:$0xff] %vm247_vm0, %v429_v14 }
  0xf8   : >> { %v913_v15 = vpop.f32.mrb[2].mxu0  ;;  %v923_v16 = vpop.f32.mrb[2].mxu1 }
  0xf9   : >> { %350 = vst.msk [vmem:[%s346_s23 + $0x18] sm:$0xff] %vm247_vm0, %v913_v15  ;;  %452 = vst.msk [vmem:[%s448_s25 + $0x18] sm:$0xff] %vm247_vm0, %v923_v16  ;;  %v336_v17 = vpop.f32.mrb[3].mxu0  ;;  %v439_v18 = vpop.f32.mrb[3].mxu1 }
  0xfa   : >> { %349 = vst.msk [vmem:[%s346_s23 + $0x10] sm:$0xff] %vm247_vm0, %v336_v17  ;;  %451 = vst.msk [vmem:[%s448_s25 + $0x10] sm:$0xff] %vm247_vm0, %v439_v18  ;;  %s1289_s23 = scalar_lea.hbm (%p239_p11), %s1345_s5, %s871_s14  ;;  %s1029_s25 = scalar_lea.vmem (%p239_p11), %s1291_s16, 1024 }
  0xfb   : > { %p1030_p12 = scmp.ne.s32.totalorder %s1291_s16, %s1029_s25  ;;  %p1037_p2 = scmp.lt.s32.totalorder %s1035_s8, %s1029_s25 }
  0xfd   : > { %p1031_p13 = pnand %p1030_p12, %p1172_p5  ;;  %p1038_p3 = por %p1037_p2, %p1036_p1 }
  0xff   : > { %p1032_p0 = pneg %p1031_p13 }
 0x101   : > { %v461_v24 = vld [vmem:[#allocation3] sm:$0xff]  ;;  %v462_v27 = vld [vmem:[#allocation3 + $0x8] sm:$0xff]  ;;  %v463_v29 = vld [vmem:[#allocation3 + $0x10] sm:$0xff]  ;;  %p1039_p4 = pnand %p1038_p3, %p1032_p0 }
 0x102   : > { %v453_v25 = vld [vmem:[#allocation2] sm:$0xff]  ;;  %928 = vmatprep.mubr.msk.f32.mxu1 %vm247_vm0, %v461_v24  ;;  %v454_v28 = vld [vmem:[#allocation2 + $0x8] sm:$0xff]  ;;  %v455_v30 = vld [vmem:[#allocation2 + $0x10] sm:$0xff] }
 0x103   : > { %944 = vmatprep.mubr.msk.f32.mxu0 %vm247_vm0, %v453_v25  ;;  %929 = vmatmul.mubr.msk.f32.vlgmr.msra.gmra.mrb[0].mxu1 %vm247_vm0, %v462_v27  ;;  %v464_v31 = vld [vmem:[#allocation3 + $0x18] sm:$0xff]  ;;  %v465_v33 = vld [vmem:[#allocation3 + $0x20] sm:$0xff]  ;;  %v466_v35 = vld [vmem:[#allocation3 + $0x28] sm:$0xff] }
 0x104   : > { %945 = vmatmul.mubr.msk.f32.vlgmr.msra.gmra.mrb[0].mxu0 %vm247_vm0, %v454_v28  ;;  %931 = vmatprep.mubr.msk.f32.mxu1 %vm247_vm0, %v463_v29  ;;  %v456_v32 = vld [vmem:[#allocation2 + $0x18] sm:$0xff]  ;;  %v457_v34 = vld [vmem:[#allocation2 + $0x20] sm:$0xff]  ;;  %v458_v36 = vld [vmem:[#allocation2 + $0x28] sm:$0xff] }
 0x105   : > { %947 = vmatprep.mubr.msk.f32.mxu0 %vm247_vm0, %v455_v30  ;;  %v467_v37 = vld [vmem:[#allocation3 + $0x30] sm:$0xff]  ;;  %v468_v39 = vld [vmem:[#allocation3 + $0x38] sm:$0xff] }
 0x106   : > { %v459_v38 = vld [vmem:[#allocation2 + $0x30] sm:$0xff]  ;;  %v460_v40 = vld [vmem:[#allocation2 + $0x38] sm:$0xff] }
 0x107   : > { %932 = vmatmul.mubr.msk.f32.gmra.mrb[2].mxu1 %vm247_vm0, %v464_v31 }
 0x108   : > { %948 = vmatmul.mubr.msk.f32.gmra.mrb[2].mxu0 %vm247_vm0, %v456_v32  ;;  %934 = vmatprep.mubr.msk.f32.mxu1 %vm247_vm0, %v465_v33 }
 0x109   : > { %950 = vmatprep.mubr.msk.f32.mxu0 %vm247_vm0, %v457_v34 }
 0x10b   : > { %935 = vmatmul.mubr.msk.f32.gmra.mrb[4].mxu1 %vm247_vm0, %v466_v35 }
 0x10c   : > { %951 = vmatmul.mubr.msk.f32.gmra.mrb[4].mxu0 %vm247_vm0, %v458_v36  ;;  %937 = vmatprep.mubr.msk.f32.mxu1 %vm247_vm0, %v467_v37 }
 0x10d   : > { %953 = vmatprep.mubr.msk.f32.mxu0 %vm247_vm0, %v459_v38 }
 0x10f   : > { %938 = vmatmul.mubr.msk.f32.gmra.mrb[6].mxu1 %vm247_vm0, %v468_v39 }
 0x110   : > { %954 = vmatmul.mubr.msk.f32.gmra.mrb[6].mxu0 %vm247_vm0, %v460_v40 }
 0x1d6   : > { %v930_v41 = vpop.f32.mrb[0].mxu1 }
 0x1d7   : > { %v946_v42 = vpop.f32.mrb[0].mxu0  ;;  %v564_v43 = vpop.f32.mrb[1].mxu1 }
 0x1d8   : > { %v699_v44 = vadd.f32 %v946_v42, %v930_v41  ;;  %v693_v45 = vpop.f32.mrb[1].mxu0 }
 0x1d9   : > { %v694_v46 = vadd.f32 %v693_v45, %v564_v43 }
 0x1da   : > { %734 = vst.msk [vmem:[%s1215_s15 + $0x8] sm:$0xff] %vm732_vm1, %v699_v44  ;;  %v933_v47 = vpop.f32.mrb[2].mxu1 }
 0x1db   : > { %733 = vst.msk [vmem:[%s1215_s15] sm:$0xff] %vm732_vm1, %v694_v46  ;;  %v949_v48 = vpop.f32.mrb[2].mxu0  ;;  %v574_v49 = vpop.f32.mrb[3].mxu1 }
 0x1dc   : > { %v709_v50 = vadd.f32 %v949_v48, %v933_v47  ;;  %v703_v51 = vpop.f32.mrb[3].mxu0 }
 0x1dd   : > { %v704_v52 = vadd.f32 %v703_v51, %v574_v49 }
 0x1de   : > { %736 = vst.msk [vmem:[%s1215_s15 + $0x18] sm:$0xff] %vm732_vm1, %v709_v50  ;;  %v936_v53 = vpop.f32.mrb[4].mxu1 }
 0x1df   : > { %735 = vst.msk [vmem:[%s1215_s15 + $0x10] sm:$0xff] %vm732_vm1, %v704_v52  ;;  %v952_v54 = vpop.f32.mrb[4].mxu0  ;;  %v584_v55 = vpop.f32.mrb[5].mxu1 }
 0x1e0   : > { %v719_v56 = vadd.f32 %v952_v54, %v936_v53  ;;  %v713_v57 = vpop.f32.mrb[5].mxu0 }
 0x1e1   : > { %v714_v58 = vadd.f32 %v713_v57, %v584_v55 }
 0x1e2   : > { %738 = vst.msk [vmem:[%s1215_s15 + $0x28] sm:$0xff] %vm732_vm1, %v719_v56  ;;  %v939_v59 = vpop.f32.mrb[6].mxu1 }
 0x1e3   : > { %737 = vst.msk [vmem:[%s1215_s15 + $0x20] sm:$0xff] %vm732_vm1, %v714_v58  ;;  %v955_v60 = vpop.f32.mrb[6].mxu0  ;;  %v594_v61 = vpop.f32.mrb[7].mxu1 }
 0x1e4   : > { %v729_v62 = vadd.f32 %v955_v60, %v939_v59  ;;  %v723_v63 = vpop.f32.mrb[7].mxu0 }
 0x1e5   : > { %v724_v0 = vadd.f32 %v723_v63, %v594_v61 }
 0x1e6   : > { %740 = vst.msk [vmem:[%s1215_s15 + $0x38] sm:$0xff] %vm732_vm1, %v729_v62 }
 0x1e7   : > { %739 = vst.msk [vmem:[%s1215_s15 + $0x30] sm:$0xff] %vm732_vm1, %v724_v0 }
 0x1e8   : > { %1042 = shalt.err (!%p1039_p4)
}
 0x1e9   : > { %s1043_s30 = scalar_lea.hbm %s1289_s23, 1024  ;;  %s1047_s10 = scalar_lea.hbm %s1345_s5, 4096 }
 0x1ea   : > { %p1044_p7 = scmp.ne.s32.totalorder %s1289_s23, %s1043_s30  ;;  %p1048_p10 = scmp.lt.u32.totalorder %s1289_s23, %s1345_s5 }
 0x1eb   : > { %p1049_p11 = scmp.lt.u32.totalorder %s1047_s10, %s1043_s30  ;;  %p1051_p13 = scmp.lt.u32.totalorder %s1043_s30, %s1289_s23 }
 0x1ec   : > { %p1045_p8 = pnand %p1044_p7, %p1172_p5 }
 0x1ed   : > { %p1050_p12 = por %p1049_p11, %p1048_p10 }
 0x1ee   : > { %p1046_p9 = pneg %p1045_p8 }
 0x1ef   : > { %p1052_p0 = por %p1051_p13, %p1050_p12 }
 0x1f1   : > { %p1053_p1 = pnand %p1052_p0, %p1046_p9 }
 0x1f3   : > { %1056 = shalt.err (!%p1053_p1)
}
 0x1f4   : > { %s1102_s6 = smov 128   ;;  %s1103_s14 = smov 8  }
 0x1f5   : > { %980 = dma.vmem_to_hbm [thread:$0]  (%p1172_p5), %s1291_s16, 1024, %s1289_s23, %s1299_s22, %s1102_s6, %s1102_s6, %s1103_s14  }
 0x1f6 PF: > { %p986_p2 = scmp.ge.s32.totalorder %s1095_s21, 2  ;;  %s771_s17 = sand.u32 1, %s1083_s18  }
 0x1f7   : > { %s772_s13 = scalar_lea.sflag [#allocation5], %s771_s17 }
 0x1f8   : > { %p983_p3 = pnand %p986_p2, %p1176_p6 }
 0x1fa   : > { %1078 = dma.done.wait (!%p983_p3), %s772_s13, 1024  }
 0x1fb   : > { %1080 = vsyncadd (!%p983_p3), %s772_s13, 4294966272  ;;  %p15_p4 = scmp.ge.s32.totalorder %s1159_s24, 6   ;;  %s1348_s18 = smov %s1087_s19 }
 0x1fc   : > { %s1349_s19 = smov %s1091_s20  ;;  %s1350_s20 = smov %s1170_s27 }
 0x1fd   : > { %s1351_s21 = smov %s1159_s24  ;;  %17 = sbr.rel (!%p15_p4) target bundleno = 3 (0x3), region = 96 }
 0x204   :  { %777 = vsyncpa [#allocation5], 1 }
 0x205   :  { %779 = vsyncpa [#allocation5 + $0x1], 1 }

</bundles_post_ra>
